<compile_context>
chip_gen: v6e
topology: v6e:2x2x1
jax: 0.10.0
libtpu: 0.0.40
codegen_flags: <defaults>
</compile_context>

<pallas_src>
import math
import functools
import numpy as np

import jax
import jax.numpy as jnp
from jax import lax
from jax.experimental import pallas as pl
from jax.experimental.pallas import tpu as pltpu


# --------------------------------------------------------------------------
# Chip-aware sizing helpers
# --------------------------------------------------------------------------
def _vmem_budget_bytes():
    """VMEM request per generation (headroom left for Mosaic internal scratch)."""
    try:
        cap = int(pltpu.get_tpu_info().vmem_capacity_bytes)
    except Exception:   # API drift / non-TPU tracing -> conservative default
        cap = 64 * 1024 * 1024
    # v7x (64 MiB) -> 40 MiB, v5e/v6e (128 MiB) -> 80 MiB (capped at 96 MiB).
    return max(32 * 1024 * 1024, min((cap * 5) // 8, 96 * 1024 * 1024))


def _pick_q_tile(S, H, vmem_budget):
    """Largest query tile whose live (H, tq, S) f32 softmax temporaries fit."""
    for t in (512, 256, 128, 64, 32, 16, 8):
        if t <= S and S % t == 0 and 3 * H * t * S * 4 <= vmem_budget // 3:
            return t
    return S


def _pick_kv_tile(S, H, D, vmem_budget):
    for t in (1024, 512, 256, 128, 64, 32, 16, 8):
        if t <= S and S % t == 0 and 2 * H * t * D * 4 <= vmem_budget // 4:
            return t
    return S


def _const_spec(shape):
    zeros = (0,) * len(shape)
    return pl.BlockSpec(shape, lambda b, i, _z=zeros: _z)


# --------------------------------------------------------------------------
# Kernel 1: K/V projections, head-major (run once per sequence tile; amortized
# over all query tiles).  kq_same=True -> K uses wq/bq.
# --------------------------------------------------------------------------
def _kv_proj_kernel(k_ref, v_ref, wk_ref, bk_ref, wv_ref, bv_ref,
                    kh_ref, vh_ref, *, n_heads, compute_dtype):
    H = n_heads
    ts, D = k_ref.shape[1], k_ref.shape[2]
    cd = compute_dtype

    # Head-major projection via a batched dot_general (broadcast lhs over heads);
    # avoids per-head lane slices and masked sub-lane stores entirely.
    k_b = jnp.broadcast_to(k_ref[0].astype(cd)[None], (H, ts, D))
    v_b = jnp.broadcast_to(v_ref[0].astype(cd)[None], (H, ts, D))
    kh = lax.dot_general(k_b, wk_ref[...], (((2,), (1,)), ((0,), (0,))),
                         preferred_element_type=jnp.float32) + bk_ref[...]
    vh = lax.dot_general(v_b, wv_ref[...], (((2,), (1,)), ((0,), (0,))),
                         preferred_element_type=jnp.float32) + bv_ref[...]
    kh_ref[0] = kh.astype(cd)
    vh_ref[0] = vh.astype(cd)


# --------------------------------------------------------------------------
# Kernel 2: full layer for one (batch element, query tile).
# --------------------------------------------------------------------------
def _layer_kernel(
    q_ref, kh_ref, vh_ref, gate_ref,
    wq_ref, bq_ref, wo_ref, bo_ref,
    g1_ref, be1_ref,
    wf1_ref, bf1_ref, wf2_ref, bf2_ref,
    g2_ref, be2_ref,
    o_ref,
    *, n_heads, mask_flag, apply_pos, compute_dtype, approx_recip,
):
    H = n_heads
    tq, D = q_ref.shape[1], q_ref.shape[2]
    S = kh_ref.shape[2]
    cd = compute_dtype
    qi = pl.program_id(1)

    q_in = q_ref[0]                                        # (tq, D) f32 (residual)

    # Q projection, head-major via batched dot_general (1/sqrt(dk) folded into
    # wq/bq in the wrapper).  No per-head slices / masked stores.
    q_b = jnp.broadcast_to(q_in.astype(cd)[None], (H, tq, D))
    qh = lax.dot_general(q_b, wq_ref[...], (((2,), (1,)), ((0,), (0,))),
                         preferred_element_type=jnp.float32) + bq_ref[...]

    # Head-batched scores: (H, tq, dk) x (H, S, dk) -> (H, tq, S)
    s = lax.dot_general(qh.astype(cd), kh_ref[0],
                        (((2,), (2,)), ((0,), (0,))),
                        preferred_element_type=jnp.float32)

    # Causal mask generated in-kernel (no HBM (S,S) bias, no per-tile DMA).
    row = qi * tq + lax.broadcasted_iota(jnp.int32, (tq, S), 0)
    col = lax.broadcasted_iota(jnp.int32, (tq, S), 1)
    allowed = (col < row) if mask_flag == 0 else (col <= row)
    s = jnp.where(allowed[None, :, :], s, jnp.float32(-1e30))

    # Online-style softmax with DEFERRED normalization: the 1/denom (and the MoH
    # gate) are applied to the (H, tq, dk) context, not the (H, tq, S) probs.
    m = jnp.max(s, axis=-1, keepdims=True)
    e = jnp.exp(s - m)
    denom = jnp.sum(e, axis=-1, keepdims=True)                       # (H, tq, 1)
    ctx = lax.dot_general(e.astype(cd), vh_ref[0],
                          (((2,), (1,)), ((0,), (0,))),
                          preferred_element_type=jnp.float32)         # (H, tq, dk)
    ctx = ctx * (gate_ref[0] * pl.reciprocal(denom, approx=approx_recip))

    # Head-contracted output projection (replaces concat + packed (D,D) matmul):
    # attn = sum_h ctx[h] @ Wo[h]
    per_head = lax.dot_general(ctx.astype(cd), wo_ref[...],
                               (((2,), (1,)), ((0,), (0,))),
                               preferred_element_type=jnp.float32)    # (H, tq, D)
    attn_out = jnp.sum(per_head, axis=0) + bo_ref[...]

    # residual + LayerNorm1 (fused E[x], E[x^2]); dropout1 identity in eval.
    x = q_in + attn_out
    mu = jnp.mean(x, axis=-1, keepdims=True)
    var = jnp.mean(x * x, axis=-1, keepdims=True) - mu * mu
    x = (x - mu) * lax.rsqrt(var + 1e-5) * g1_ref[...] + be1_ref[...]

    if apply_pos:
        # transformer_FFN: Linear(D,D) -> ReLU -> (Dropout) -> Linear(D,D)
        h1 = jnp.dot(x.astype(cd), wf1_ref[...],
                     preferred_element_type=jnp.float32) + bf1_ref[...]
        h1 = jnp.maximum(h1, 0.0)
        ffn = jnp.dot(h1.astype(cd), wf2_ref[...],
                      preferred_element_type=jnp.float32) + bf2_ref[...]
        y = x + ffn
        mu2 = jnp.mean(y, axis=-1, keepdims=True)
        var2 = jnp.mean(y * y, axis=-1, keepdims=True) - mu2 * mu2
        y = (y - mu2) * lax.rsqrt(var2 + 1e-5) * g2_ref[...] + be2_ref[...]
        o_ref[0] = y
    else:
        o_ref[0] = x


# --------------------------------------------------------------------------
# MoH routing (glue, plain JAX): top-k gating over the dynamic heads plus the
# load-balance loss.  O(B*S*n_dyn) -- negligible next to the layer.
# --------------------------------------------------------------------------
def moh_routing(query, wg, n_heads, n_shared_heads, n_selected_heads):
    B, S, _ = query.shape
    n_dyn = n_heads - n_shared_heads
    logits = jnp.einsum("bsd,dn->bsn", query, wg)
    probs = jax.nn.softmax(logits, axis=-1)
    top_v, top_i = jax.lax.top_k(logits, n_selected_heads)
    top_p = jax.nn.softmax(top_v, axis=-1)
    one_hot = jax.nn.one_hot(top_i, n_dyn, dtype=logits.dtype)
    dyn_gates = jnp.einsum("bsk,bskn->bsn", top_p, one_hot)
    gates = jnp.concatenate(
        [jnp.ones((B, S, n_shared_heads), logits.dtype), dyn_gates], axis=-1)
    # TODO(synk): exact MoHAttention.get_balance_loss source not provided; this is
    # the standard MoH/Switch load-balance loss  n_dyn * sum_i f_i * P_i.
    f = one_hot.sum(axis=2).reshape(-1, n_dyn).mean(axis=0)
    P = probs.reshape(-1, n_dyn).mean(axis=0)
    balance_loss = n_dyn * jnp.sum(f * P)
    return gates, balance_loss


# --------------------------------------------------------------------------
# Wrapper mirroring RouterCL4KTTransformerLayer.forward(mask, query, key, values)
# --------------------------------------------------------------------------
def router_cl4kt_transformer_layer(mask_flag, query, key, values, params, *,
                                   n_heads, n_shared_heads, n_selected_heads,
                                   apply_pos=True, compute_dtype=jnp.float32):
    B, S, D = query.shape
    H = n_heads
    dk = D // H
    cd = compute_dtype
    f32 = jnp.float32
    approx_recip = (jnp.dtype(cd) == jnp.dtype(jnp.bfloat16))

    budget = _vmem_budget_bytes()
    tq = _pick_q_tile(S, H, budget)
    ts = _pick_kv_tile(S, H, D, budget)

    # Routing gates -> head-major (B, H, S, 1); no dk-wide expansion.
    gates, balance_loss = moh_routing(
        query, params["wg"], n_heads, n_shared_heads, n_selected_heads)
    gates_hm = jnp.transpose(gates, (0, 2, 1))[..., None].astype(f32)

    # Head-major weight prep (wrapper-side layout plumbing).
    inv_sqrt_dk = 1.0 / math.sqrt(dk)
    wq_h = jnp.transpose(params["wq"].reshape(D, H, dk), (1, 0, 2))   # (H, D, dk)
    bq_h = params["bq"].reshape(H, dk)[:, None, :]                    # (H, 1, dk)
    wv_h = jnp.transpose(params["wv"].reshape(D, H, dk), (1, 0, 2))
    bv_h = params["bv"].reshape(H, dk)[:, None, :]
    wq_h_scaled = (wq_h * inv_sqrt_dk).astype(cd)                     # scale folded into Q side only
    bq_h_scaled = (bq_h * inv_sqrt_dk).astype(f32)
    wo_h = params["wo"].reshape(H, dk, D).astype(cd)

    # ---- pass 1: K/V head-major projections (kq_same=True -> K uses wq/bq) ----
    kh, vh = pl.pallas_call(
        functools.partial(_kv_proj_kernel, n_heads=H, compute_dtype=cd),
        out_shape=(jax.ShapeDtypeStruct((B, H, S, dk), cd),
                   jax.ShapeDtypeStruct((B, H, S, dk), cd)),
        grid_spec=pltpu.PrefetchScalarGridSpec(
            num_scalar_prefetch=0,
            grid=(B, S // ts),
            in_specs=[
                pl.BlockSpec((1, ts, D), lambda b, si: (b, si, 0)),
                pl.BlockSpec((1, ts, D), lambda b, si: (b, si, 0)),
                _const_spec((H, D, dk)),   # wk (== wq, unscaled)
                _const_spec((H, 1, dk)),   # bk
                _const_spec((H, D, dk)),   # wv
                _const_spec((H, 1, dk)),   # bv
            ],
            out_specs=(pl.BlockSpec((1, H, ts, dk), lambda b, si: (b, 0, si, 0)),
                       pl.BlockSpec((1, H, ts, dk), lambda b, si: (b, 0, si, 0))),
        ),
        compiler_params=pltpu.CompilerParams(
            dimension_semantics=("parallel", "parallel"),
            vmem_limit_bytes=budget),
    )(key.astype(cd), values.astype(cd),
      wq_h.astype(cd), bq_h.astype(f32), wv_h.astype(cd), bv_h.astype(f32))

    # ---- pass 2: the full layer, grid = (batch, query tile), both parallel ----
    # TODO(synk): single-buffer the constant-index weight / K / V specs via
    # pipeline_mode=pl.Buffered(1) once verified on the target jax version, and
    # add flash-style K-axis chunking with causal block skipping for very long S.
    out = pl.pallas_call(
        functools.partial(_layer_kernel, n_heads=H, mask_flag=int(mask_flag),
                          apply_pos=apply_pos, compute_dtype=cd,
                          approx_recip=approx_recip),
        out_shape=jax.ShapeDtypeStruct((B, S, D), f32),
        grid_spec=pltpu.PrefetchScalarGridSpec(
            num_scalar_prefetch=0,
            grid=(B, S // tq),
            in_specs=[
                pl.BlockSpec((1, tq, D), lambda b, qi: (b, qi, 0)),        # query
                pl.BlockSpec((1, H, S, dk), lambda b, qi: (b, 0, 0, 0)),   # K heads
                pl.BlockSpec((1, H, S, dk), lambda b, qi: (b, 0, 0, 0)),   # V heads
                pl.BlockSpec((1, H, tq, 1), lambda b, qi: (b, 0, qi, 0)),  # gates
                _const_spec((H, D, dk)),   # wq (scaled)
                _const_spec((H, 1, dk)),   # bq (scaled)
                _const_spec((H, dk, D)),   # wo (head-major)
                _const_spec((1, D)),       # bo
                _const_spec((1, D)),       # ln1 gamma
                _const_spec((1, D)),       # ln1 beta
                _const_spec((D, D)),       # ffn w1
                _const_spec((1, D)),       # ffn b1
                _const_spec((D, D)),       # ffn w2
                _const_spec((1, D)),       # ffn b2
                _const_spec((1, D)),       # ln2 gamma
                _const_spec((1, D)),       # ln2 beta
            ],
            out_specs=pl.BlockSpec((1, tq, D), lambda b, qi: (b, qi, 0)),
        ),
        compiler_params=pltpu.CompilerParams(
            dimension_semantics=("parallel", "parallel"),
            vmem_limit_bytes=budget),
    )(query.astype(f32), kh, vh, gates_hm,
      wq_h_scaled, bq_h_scaled, wo_h, params["bo"].astype(f32),
      params["ln1_g"].astype(f32), params["ln1_b"].astype(f32),
      params["ffn_w1"].astype(cd), params["ffn_b1"].astype(f32),
      params["ffn_w2"].astype(cd), params["ffn_b2"].astype(f32),
      params["ln2_g"].astype(f32), params["ln2_b"].astype(f32))
    return out, balance_loss


# --------------------------------------------------------------------------
# Pure-JAX reference (faithful mirror of the torch layer, for checking only).
# --------------------------------------------------------------------------
def reference(mask_flag, query, key, values, params, n_heads, n_shared, n_selected):
    B, S, D = query.shape
    H, dk = n_heads, D // n_heads
    if mask_flag == 0:
        nopeek = np.triu(np.ones((S, S)), k=0)
    else:
        nopeek = np.triu(np.ones((S, S)), k=1)
    src_mask = jnp.asarray((1.0 - nopeek) > 0)

    gates, bal = moh_routing(query, params["wg"], H, n_shared, n_selected)

    qp = query @ params["wq"] + params["bq"]
    kp = key @ params["wq"] + params["bq"]
    vp = values @ params["wv"] + params["bv"]
    qh = qp.reshape(B, S, H, dk).transpose(0, 2, 1, 3)
    kh = kp.reshape(B, S, H, dk).transpose(0, 2, 1, 3)
    vh = vp.reshape(B, S, H, dk).transpose(0, 2, 1, 3)
    s = jnp.einsum("bhqd,bhkd->bhqk", qh, kh) / math.sqrt(dk)
    s = jnp.where(src_mask[None, None], s, -1e30)
    p = jax.nn.softmax(s, axis=-1)
    ctx = jnp.einsum("bhqk,bhkd->bhqd", p, vh).transpose(0, 2, 1, 3)
    ctx = ctx * gates[..., None]
    attn = ctx.reshape(B, S, D) @ params["wo"] + params["bo"]

    def ln(x, g, b):
        mu = x.mean(-1, keepdims=True)
        var = ((x - mu) ** 2).mean(-1, keepdims=True)
        return (x - mu) / jnp.sqrt(var + 1e-5) * g + b

    x = ln(query + attn, params["ln1_g"], params["ln1_b"])
    h1 = jnp.maximum(x @ params["ffn_w1"] + params["ffn_b1"], 0.0)
    ffn = h1 @ params["ffn_w2"] + params["ffn_b2"]
    y = ln(x + ffn, params["ln2_g"], params["ln2_b"])
    return y, bal


if __name__ == "__main__":
    B, S, D = 2, 8, 32
    n_heads, n_shared, n_selected = 4, 2, 1

    key0 = jax.random.PRNGKey(0)
    ks = jax.random.split(key0, 16)

    def init(k, shape, scale=0.1):
        return (scale * jax.random.normal(k, shape)).astype(jnp.float32)

    params = {
        "wq": init(ks[0], (D, D)), "bq": init(ks[1], (1, D)),
        "wv": init(ks[2], (D, D)), "bv": init(ks[3], (1, D)),
        "wo": init(ks[4], (D, D)), "bo": init(ks[5], (1, D)),
        "wg": init(ks[6], (D, n_heads - n_shared)),
        "ln1_g": jnp.ones((1, D), jnp.float32), "ln1_b": jnp.zeros((1, D), jnp.float32),
        "ffn_w1": init(ks[7], (D, D)), "ffn_b1": init(ks[8], (1, D)),
        "ffn_w2": init(ks[9], (D, D)), "ffn_b2": init(ks[10], (1, D)),
        "ln2_g": jnp.ones((1, D), jnp.float32), "ln2_b": jnp.zeros((1, D), jnp.float32),
    }

    query = jax.random.normal(ks[11], (B, S, D), jnp.float32)
    key_t = jax.random.normal(ks[12], (B, S, D), jnp.float32)
    values = jax.random.normal(ks[13], (B, S, D), jnp.float32)

    ref_out, ref_bal = reference(1, query, key_t, values, params,
                                 n_heads, n_shared, n_selected)

    # f32 compute path: strict check against the reference.
    out_f32, bal = router_cl4kt_transformer_layer(
        1, query, key_t, values, params,
        n_heads=n_heads, n_shared_heads=n_shared, n_selected_heads=n_selected,
        apply_pos=True, compute_dtype=jnp.float32)
    out_f32 = jax.block_until_ready(out_f32)
    bal = jax.block_until_ready(bal)
    assert np.allclose(np.asarray(out_f32), np.asarray(ref_out), rtol=1e-4, atol=1e-4)
    assert np.allclose(float(bal), float(ref_bal), rtol=1e-5, atol=1e-5)

    # bf16 MXU path (f32 accumulation): looser tolerance, expected precision loss.
    out_bf16, _ = router_cl4kt_transformer_layer(
        1, query, key_t, values, params,
        n_heads=n_heads, n_shared_heads=n_shared, n_selected_heads=n_selected,
        apply_pos=True, compute_dtype=jnp.bfloat16)
    out_bf16 = jax.block_until_ready(out_bf16)
    assert np.allclose(np.asarray(out_bf16), np.asarray(ref_out), rtol=2e-1, atol=2e-1)

    print("KERNEL_OK")
</pallas_src>

<mosaic_0001>
module attributes {stable_mosaic.version = 11 : i64} {
  func.func @_kv_proj_kernel(%arg0: i32, %arg1: i32, %arg2: memref<1x8x32xf32, #tpu.memory_space<vmem>>, %arg3: memref<1x8x32xf32, #tpu.memory_space<vmem>>, %arg4: memref<4x32x8xf32, #tpu.memory_space<vmem>>, %arg5: memref<4x1x8xf32, #tpu.memory_space<vmem>>, %arg6: memref<4x32x8xf32, #tpu.memory_space<vmem>>, %arg7: memref<4x1x8xf32, #tpu.memory_space<vmem>>, %arg8: memref<1x4x8x8xf32, #tpu.memory_space<vmem>>, %arg9: memref<1x4x8x8xf32, #tpu.memory_space<vmem>>) attributes {dimension_semantics = [#tpu.dimension_semantics<parallel>, #tpu.dimension_semantics<parallel>], iteration_bounds = array<i64: 2, 1>, scalar_prefetch = 0 : i64, scratch_operands = 0 : i64, tpu.core_type = #tpu.core_type<tc>, window_params = [{transform_indices = @transform_0, window_bounds = array<i64: 1, 8, 32>}, {transform_indices = @transform_1, window_bounds = array<i64: 1, 8, 32>}, {pipeline_mode = #tpu.pipeline_mode<synchronous>, transform_indices = @transform_2, window_bounds = array<i64: 4, 32, 8>}, {pipeline_mode = #tpu.pipeline_mode<synchronous>, transform_indices = @transform_3, window_bounds = array<i64: 4, 1, 8>}, {pipeline_mode = #tpu.pipeline_mode<synchronous>, transform_indices = @transform_4, window_bounds = array<i64: 4, 32, 8>}, {pipeline_mode = #tpu.pipeline_mode<synchronous>, transform_indices = @transform_5, window_bounds = array<i64: 4, 1, 8>}, {transform_indices = @transform_6, window_bounds = array<i64: 1, 4, 8, 8>}, {transform_indices = @transform_7, window_bounds = array<i64: 1, 4, 8, 8>}]} {
    %c0 = arith.constant 0 : index
    %c0_0 = arith.constant 0 : index
    %c0_1 = arith.constant 0 : index
    %0 = vector.load %arg2[%c0, %c0_0, %c0_1] : memref<1x8x32xf32, #tpu.memory_space<vmem>>, vector<1x8x32xf32>
    %1 = vector.shape_cast %0 : vector<1x8x32xf32> to vector<8x32xf32>
    %2 = vector.shape_cast %1 : vector<8x32xf32> to vector<1x8x32xf32>
    %3 = vector.shape_cast %2 : vector<1x8x32xf32> to vector<1x8x32xf32>
    %4 = vector.broadcast %3 : vector<1x8x32xf32> to vector<4x8x32xf32>
    %c0_2 = arith.constant 0 : index
    %c0_3 = arith.constant 0 : index
    %c0_4 = arith.constant 0 : index
    %5 = vector.load %arg3[%c0_2, %c0_3, %c0_4] : memref<1x8x32xf32, #tpu.memory_space<vmem>>, vector<1x8x32xf32>
    %6 = vector.shape_cast %5 : vector<1x8x32xf32> to vector<8x32xf32>
    %7 = vector.shape_cast %6 : vector<8x32xf32> to vector<1x8x32xf32>
    %8 = vector.shape_cast %7 : vector<1x8x32xf32> to vector<1x8x32xf32>
    %9 = vector.broadcast %8 : vector<1x8x32xf32> to vector<4x8x32xf32>
    %c0_5 = arith.constant 0 : index
    %c0_6 = arith.constant 0 : index
    %c0_7 = arith.constant 0 : index
    %10 = vector.load %arg4[%c0_5, %c0_6, %c0_7] : memref<4x32x8xf32, #tpu.memory_space<vmem>>, vector<4x32x8xf32>
    %cst = arith.constant dense<0.000000e+00> : vector<4x8x8xf32>
    %11 = tpu.matmul %4, %10, %cst {dimension_numbers = #tpu.dot_dimension_numbers<[2], [1], [1], [2], [0, 0, 0, 1, 1, 2], [0], [0]>} : vector<4x8x32xf32>, vector<4x32x8xf32>, vector<4x8x8xf32> -> vector<4x8x8xf32>
    %c0_8 = arith.constant 0 : index
    %c0_9 = arith.constant 0 : index
    %c0_10 = arith.constant 0 : index
    %12 = vector.load %arg5[%c0_8, %c0_9, %c0_10] : memref<4x1x8xf32, #tpu.memory_space<vmem>>, vector<4x1x8xf32>
    %13 = vector.broadcast %12 : vector<4x1x8xf32> to vector<4x8x8xf32>
    %14 = arith.addf %11, %13 : vector<4x8x8xf32>
    %c0_11 = arith.constant 0 : index
    %c0_12 = arith.constant 0 : index
    %c0_13 = arith.constant 0 : index
    %15 = vector.load %arg6[%c0_11, %c0_12, %c0_13] : memref<4x32x8xf32, #tpu.memory_space<vmem>>, vector<4x32x8xf32>
    %cst_14 = arith.constant dense<0.000000e+00> : vector<4x8x8xf32>
    %16 = tpu.matmul %9, %15, %cst_14 {dimension_numbers = #tpu.dot_dimension_numbers<[2], [1], [1], [2], [0, 0, 0, 1, 1, 2], [0], [0]>} : vector<4x8x32xf32>, vector<4x32x8xf32>, vector<4x8x8xf32> -> vector<4x8x8xf32>
    %c0_15 = arith.constant 0 : index
    %c0_16 = arith.constant 0 : index
    %c0_17 = arith.constant 0 : index
    %17 = vector.load %arg7[%c0_15, %c0_16, %c0_17] : memref<4x1x8xf32, #tpu.memory_space<vmem>>, vector<4x1x8xf32>
    %18 = vector.broadcast %17 : vector<4x1x8xf32> to vector<4x8x8xf32>
    %19 = arith.addf %16, %18 : vector<4x8x8xf32>
    %c0_18 = arith.constant 0 : index
    %c0_19 = arith.constant 0 : index
    %c0_20 = arith.constant 0 : index
    %c0_21 = arith.constant 0 : index
    %20 = vector.load %arg8[%c0_18, %c0_19, %c0_20, %c0_21] : memref<1x4x8x8xf32, #tpu.memory_space<vmem>>, vector<1x4x8x8xf32>
    %21 = vector.shape_cast %20 : vector<1x4x8x8xf32> to vector<4x8x8xf32>
    %22 = vector.shape_cast %14 : vector<4x8x8xf32> to vector<1x4x8x8xf32>
    tpu.vector_store %arg8[%c0_18, %c0_19, %c0_20, %c0_21], %22 {strides = array<i32>} : memref<1x4x8x8xf32, #tpu.memory_space<vmem>>, vector<1x4x8x8xf32>,
    %c0_22 = arith.constant 0 : index
    %c0_23 = arith.constant 0 : index
    %c0_24 = arith.constant 0 : index
    %c0_25 = arith.constant 0 : index
    %23 = vector.load %arg9[%c0_22, %c0_23, %c0_24, %c0_25] : memref<1x4x8x8xf32, #tpu.memory_space<vmem>>, vector<1x4x8x8xf32>
    %24 = vector.shape_cast %23 : vector<1x4x8x8xf32> to vector<4x8x8xf32>
    %25 = vector.shape_cast %19 : vector<4x8x8xf32> to vector<1x4x8x8xf32>
    tpu.vector_store %arg9[%c0_22, %c0_23, %c0_24, %c0_25], %25 {strides = array<i32>} : memref<1x4x8x8xf32, #tpu.memory_space<vmem>>, vector<1x4x8x8xf32>,
    return
  }
  func.func @transform_0(%arg0: i32, %arg1: i32) -> (i32, i32, i32) {
    %c0_i32 = arith.constant 0 : i32
    %c0_i32_0 = arith.constant 0 : i32
    return %arg0, %arg1, %c0_i32 : i32, i32, i32
  }
  func.func @transform_1(%arg0: i32, %arg1: i32) -> (i32, i32, i32) {
    %c0_i32 = arith.constant 0 : i32
    %c0_i32_0 = arith.constant 0 : i32
    return %arg0, %arg1, %c0_i32 : i32, i32, i32
  }
  func.func @transform_2(%arg0: i32, %arg1: i32) -> (i32, i32, i32) {
    %c0_i32 = arith.constant 0 : i32
    %c0_i32_0 = arith.constant 0 : i32
    %c0_i32_1 = arith.constant 0 : i32
    %c0_i32_2 = arith.constant 0 : i32
    return %c0_i32, %c0_i32_0, %c0_i32_1 : i32, i32, i32
  }
  func.func @transform_3(%arg0: i32, %arg1: i32) -> (i32, i32, i32) {
    %c0_i32 = arith.constant 0 : i32
    %c0_i32_0 = arith.constant 0 : i32
    %c0_i32_1 = arith.constant 0 : i32
    %c0_i32_2 = arith.constant 0 : i32
    return %c0_i32, %c0_i32_0, %c0_i32_1 : i32, i32, i32
  }
  func.func @transform_4(%arg0: i32, %arg1: i32) -> (i32, i32, i32) {
    %c0_i32 = arith.constant 0 : i32
    %c0_i32_0 = arith.constant 0 : i32
    %c0_i32_1 = arith.constant 0 : i32
    %c0_i32_2 = arith.constant 0 : i32
    return %c0_i32, %c0_i32_0, %c0_i32_1 : i32, i32, i32
  }
  func.func @transform_5(%arg0: i32, %arg1: i32) -> (i32, i32, i32) {
    %c0_i32 = arith.constant 0 : i32
    %c0_i32_0 = arith.constant 0 : i32
    %c0_i32_1 = arith.constant 0 : i32
    %c0_i32_2 = arith.constant 0 : i32
    return %c0_i32, %c0_i32_0, %c0_i32_1 : i32, i32, i32
  }
  func.func @transform_6(%arg0: i32, %arg1: i32) -> (i32, i32, i32, i32) {
    %c0_i32 = arith.constant 0 : i32
    %c0_i32_0 = arith.constant 0 : i32
    %c0_i32_1 = arith.constant 0 : i32
    return %arg0, %c0_i32, %arg1, %c0_i32_0 : i32, i32, i32, i32
  }
  func.func @transform_7(%arg0: i32, %arg1: i32) -> (i32, i32, i32, i32) {
    %c0_i32 = arith.constant 0 : i32
    %c0_i32_0 = arith.constant 0 : i32
    %c0_i32_1 = arith.constant 0 : i32
    return %arg0, %c0_i32, %arg1, %c0_i32_0 : i32, i32, i32, i32
  }
}

</mosaic_0001>

<bundles_post_ra>
// kernel: tpu_custom_call.1
= control target key start
LH: loop header
LB: loop body
LE: loop exit
PB: predicated region body
PF: predicated region fallthrough
CT: control target
= control target key end

     0   :  { %13 = vsyncpa [#allocation3], 0  ;;  %s1901_s0 = inlined_call_operand.vmem [shape: f32[2,8,32], index: 0, kind: input, shape index: {}]   ;;  %s1902_s1 = inlined_call_operand.vmem [shape: f32[2,8,32], index: 1, kind: input, shape index: {}]   ;;  %s1903_s2 = inlined_call_operand.vmem [shape: f32[4,32,8], index: 2, kind: input, shape index: {}]   ;;  %s1904_s3 = inlined_call_operand.vmem [shape: f32[4,1,8], index: 3, kind: input, shape index: {}]   ;;  %s1905_s4 = inlined_call_operand.vmem [shape: f32[4,32,8], index: 4, kind: input, shape index: {}]   ;;  %s1906_s5 = inlined_call_operand.vmem [shape: f32[4,1,8], index: 5, kind: input, shape index: {}]   ;;  %s1907_s6 = inlined_call_operand.hbm [shape: f32[2,4,8,8], index: 6, kind: output, shape index: {0}]   ;;  %s1908_s7 = inlined_call_operand.hbm [shape: f32[2,4,8,8], index: 7, kind: output, shape index: {1}]  }
   0x1   :  { %15 = vsyncpa [#allocation3 + $0x1], 0 }
   0x2   :  { %16 = vsyncpa [#allocation5], 0 }
   0x3   :  { %18 = vsyncpa [#allocation5 + $0x1], 0  ;;  %s1548_s24 = smov 0   ;;  %s1550_s25 = smov 0  }
   0x4   :  { %s1552_s26 = smov 0   ;;  %s1554_s27 = smov 0  }
   0x5   :  { %s1556_s28 = smov 0   ;;  %s1558_s29 = smov 0  }
   0x6 LB: > { %s1167_s30 = sadd.s32 4294967295, %s1500_s29   ;;  %s1168_s8 = sadd.s32 4294967294, %s1500_s29   ;;  %s1500_s29 = sphi %s1558_s29, %s24_s29   ;;  %s1496_s28 = sphi %s1556_s28, %s1919_s28   ;;  %s1492_s27 = sphi %s1554_s27, %s1918_s27   ;;  %s1488_s26 = sphi %s1552_s26, %s1917_s26   ;;  %s1484_s25 = sphi %s1550_s25, %s1916_s25   ;;  %s1480_s24 = sphi %s1548_s24, %s1915_s24  }
   0x7   : > { %s36_s9 = sadd.s32 1, %s1496_s28  ;;  %s185_s10 = sadd.s32 1, %s1488_s26 }
   0x8   : > { %p38_p0 = scmp.ge.s32.totalorder %s36_s9, 2  ;;  %p195_p1 = scmp.ne.s32.totalorder %s1488_s26, %s1484_s25 }
   0x9   : > { %p196_p2 = scmp.eq.s32.totalorder %s1167_s30, 1  ;;  %p201_p3 = scmp.ne.s32.totalorder %s1484_s25, %s1480_s24 }
   0xa   : > { %s1921_s9 = smov (%p38_p0, %s36_s9), 0  ;;  %p202_p5 = scmp.eq.s32.totalorder %s1168_s8, 1 }
   0xb   : > { %p1588_p4 = por %p196_p2, %p195_p1  ;;  %s180_s12 = ssub.s32 %s1496_s28, %s1921_s9 }
   0xc   : > { %p1171_p6 = scmp.ge.s32.totalorder %s1500_s29, 1  ;;  %p183_p7 = scmp.eq.s32.totalorder %s180_s12, 0 }
   0xd   : > { %p1595_p8 = por %p202_p5, %p201_p3  ;;  %p280_p9 = scmp.lt.s32.totalorder %s1500_s29, 3 }
   0xe   : > { %s1601_s14 = scalar_select %p183_p7, %s1488_s26, %s185_s10  }
   0xf   : > { %p281_p10 = pnand %p1171_p6, %p280_p9 }
  0x10   : > { %p326_p11 = scmp.lt.s32.totalorder (!%p281_p10), %s1492_s27, 1  ;;  %s1771_s12 = sand.u32 (!%p281_p10), 1, %s1484_s25  }
  0x11   : > { %284 = sbr.rel (%p281_p10) target bundleno = 275 (0x113), region = 44  ;;  %s1910_s16 = sshll.u32 (!%p281_p10), %s1771_s12, 5 }
  0x12   : > { %s318_s21 = scalar_lea.vmem (!%p281_p10), [#allocation2], %s1910_s16  ;;  %s1909_s30 = sshll.u32 (!%p281_p10), %s1492_s27, 9 }
  0x13   : > { %s1026_s22 = sshll.u32 (!%p281_p10), %s318_s21, 4  ;;  %s1798_s19 = scalar_lea.hbm (!%p281_p10), %s1907_s6, %s1909_s30  ;;  %s1791_s22 = int_to_ptr.vmem [resolvable:$true] %s1026_s22 }
  0x14   : > { %s1394_s8 = scalar_lea.vmem (!%p281_p10), %s1791_s22, 512 }
  0x15   : > { %p1395_p12 = scmp.ne.s32.totalorder (!%p281_p10), %s1791_s22, %s1394_s8 }
  0x16   : > { %v345_v0 = vld [vmem:[%s1903_s2 + $0x18] sm:$0xff]  ;;  %v1502_v2 = vmov 0.0   ;;  %v344_v3 = vld [vmem:[%s1903_s2 + $0x10] sm:$0xff]  ;;  %s1619_s23 = scalar_select %p326_p11, %s1492_s27, 1  ;;  %v343_v5 = vld [vmem:[%s1903_s2 + $0x8] sm:$0xff]  ;;  %vm386_vm0 = vcmask 261120  }
  0x17   : > { %v349_v1 = vld [vmem:[%s1903_s2 + $0x38] sm:$0xff]  ;;  %1242 = vmatprep.subr.mxu0 %v1502_v2  ;;  %1253 = vmatprep.subr.mxu1 %v1502_v2  ;;  %v348_v4 = vld [vmem:[%s1903_s2 + $0x30] sm:$0xff]  ;;  %v347_v6 = vld [vmem:[%s1903_s2 + $0x28] sm:$0xff]  ;;  %vm1503_vm1 = vmmov 0   ;;  %vm997_vm2 = vcmask 64512   ;;  %p1396_p13 = pnand %p1395_p12, %p1588_p4 }
  0x18   : > { %1243 = vmatpush3.msra.mxu0 %v345_v0  ;;  %1254 = vmatpush3.msra.mxu1 %v349_v1  ;;  %s1174_s15 = sshll.u32 %s1619_s23, 3  ;;  %v342_v7 = vld [vmem:[%s1903_s2] sm:$0xff]  ;;  %v353_v10 = vld [vmem:[%s1903_s2 + $0x58] sm:$0xff]  ;;  %v352_v12 = vld [vmem:[%s1903_s2 + $0x50] sm:$0xff]  ;;  %s1504_s23 = smov [#allocation2]  }
  0x19   : > { %1244 = vmatprep.subr.mxu0 %v1502_v2  ;;  %1255 = vmatprep.subr.mxu1 %v1502_v2  ;;  %s332_s20 = scalar_lea.vmem %s1901_s0, %s1174_s15  ;;  %v346_v8 = vld [vmem:[%s1903_s2 + $0x20] sm:$0xff]  ;;  %v357_v11 = vld [vmem:[%s1903_s2 + $0x78] sm:$0xff]  ;;  %v356_v13 = vld [vmem:[%s1903_s2 + $0x70] sm:$0xff]  ;;  %p1397_p0 = pneg %p1396_p13 }
  0x1a   : > { %1245 = vmatpush3.msra.mxu0 %v344_v3  ;;  %1256 = vmatpush3.msra.mxu1 %v348_v4  ;;  %v340_v9 = vld [vmem:[%s332_s20] sm:$0xff]  ;;  %v351_v14 = vld [vmem:[%s1903_s2 + $0x48] sm:$0xff]  ;;  %v673_v18 = vld [vmem:[%s1905_s4 + $0x18] sm:$0xff]  ;;  %s339_s20 = scalar_lea.vmem %s1902_s1, %s1174_s15  ;;  %s1398_s15 = sshll.u32 %s1504_s23, 4  ;;  %s1399_s15 = int_to_ptr.vmem [resolvable:$false] %s1398_s15 }
  0x1b   : > { %1246 = vmatprep.subr.mxu0 %v1502_v2  ;;  %1257 = vmatprep.subr.mxu1 %v1502_v2  ;;  %v355_v15 = vld [vmem:[%s1903_s2 + $0x68] sm:$0xff]  ;;  %v350_v16 = vld [vmem:[%s1903_s2 + $0x40] sm:$0xff]  ;;  %v677_v19 = vld [vmem:[%s1905_s4 + $0x38] sm:$0xff]  ;;  %s1400_s10 = scalar_lea.vmem %s1399_s15, 1024  ;;  %p1401_p1 = scmp.lt.s32.totalorder %s1791_s22, %s1399_s15 }
  0x1c   : > { %1247 = vmatpush3.msra.mxu0 %v343_v5  ;;  %1258 = vmatpush3.msra.mxu1 %v347_v6  ;;  %v354_v17 = vld [vmem:[%s1903_s2 + $0x60] sm:$0xff]  ;;  %v672_v20 = vld [vmem:[%s1905_s4 + $0x10] sm:$0xff]  ;;  %v671_v22 = vld [vmem:[%s1905_s4 + $0x8] sm:$0xff]  ;;  %p1402_p2 = scmp.lt.s32.totalorder %s1400_s10, %s1394_s8 }
  0x1d   : > { %1248 = vmatprep.subr.mxu0 %v1502_v2  ;;  %1259 = vmatprep.subr.mxu1 %v1502_v2  ;;  %v676_v21 = vld [vmem:[%s1905_s4 + $0x30] sm:$0xff]  ;;  %v675_v23 = vld [vmem:[%s1905_s4 + $0x28] sm:$0xff]  ;;  %v670_v24 = vld [vmem:[%s1905_s4] sm:$0xff] }
  0x1e   : > { %1249 = vmatpush3.msra.mxu0 %v342_v7  ;;  %1250 = vmatprep.mubr.msk.f32.mxu0 %vm1503_vm1, %v1502_v2  ;;  %v674_v25 = vld [vmem:[%s1905_s4 + $0x20] sm:$0xff]  ;;  %v681_v27 = vld [vmem:[%s1905_s4 + $0x58] sm:$0xff]  ;;  %v680_v29 = vld [vmem:[%s1905_s4 + $0x50] sm:$0xff]  ;;  %p1403_p3 = por %p1402_p2, %p1401_p1 }
  0x1f   : > { %1260 = vmatpush3.msra.mxu1 %v346_v8  ;;  %1261 = vmatprep.mubr.msk.f32.mxu1 %vm1503_vm1, %v1502_v2  ;;  %v341_v26 = vld [vmem:[%s339_s20] sm:$0xff]  ;;  %v685_v28 = vld [vmem:[%s1905_s4 + $0x78] sm:$0xff]  ;;  %v684_v30 = vld [vmem:[%s1905_s4 + $0x70] sm:$0xff]  ;;  %s1007_s20 = scalar_lea.sflag [#allocation3], %s1771_s12 }
  0x20   : > { %1251 = vmatmul.mubr.msk.f32.vlgmr.msra.gmra.mxu0 %vm386_vm0, %v340_v9  ;;  %1262 = vmatmul.mubr.msk.f32.vlgmr.msra.gmra.mxu1 %vm386_vm0, %v340_v9  ;;  %v679_v31 = vld [vmem:[%s1905_s4 + $0x48] sm:$0xff]  ;;  %v678_v33 = vld [vmem:[%s1905_s4 + $0x40] sm:$0xff]  ;;  %p1404_p5 = pnand %p1403_p3, %p1397_p0 }
  0x21   : > { %1264 = vmatprep.subr.mxu0 %v1502_v2  ;;  %1275 = vmatprep.subr.mxu1 %v1502_v2  ;;  %v683_v32 = vld [vmem:[%s1905_s4 + $0x68] sm:$0xff]  ;;  %v682_v34 = vld [vmem:[%s1905_s4 + $0x60] sm:$0xff] }
  0x22   : > { %1265 = vmatpush3.msra.mxu0 %v353_v10  ;;  %1276 = vmatpush3.msra.mxu1 %v357_v11  ;;  %v1176_v35 = vld [vmem:[%s1904_s3] ss:$0 sm:$0xff]  ;;  %v1177_v36 = vld [vmem:[%s1904_s3 + $0x1] ss:$0 sm:$0xff]  ;;  %v1178_v43 = vld [vmem:[%s1904_s3 + $0x2] ss:$0 sm:$0xff] }
  0x23   : > { %1266 = vmatprep.subr.mxu0 %v1502_v2  ;;  %1277 = vmatprep.subr.mxu1 %v1502_v2  ;;  %v1179_v44 = vld [vmem:[%s1904_s3 + $0x3] ss:$0 sm:$0xff] }
  0x24   : > { %1267 = vmatpush3.msra.mxu0 %v352_v12  ;;  %1278 = vmatpush3.msra.mxu1 %v356_v13 }
  0x25   : > { %1268 = vmatprep.subr.mxu0 %v1502_v2  ;;  %1279 = vmatprep.subr.mxu1 %v1502_v2 }
  0x26   : > { %1269 = vmatpush3.msra.mxu0 %v351_v14  ;;  %1280 = vmatpush3.msra.mxu1 %v355_v15 }
  0x27   : > { %1270 = vmatprep.subr.mxu0 %v1502_v2  ;;  %1281 = vmatprep.subr.mxu1 %v1502_v2 }
  0x28   : > { %1271 = vmatpush3.msra.mxu0 %v350_v16  ;;  %1272 = vmatprep.mubr.msk.f32.mxu0 %vm1503_vm1, %v1502_v2 }
  0x29   : > { %1282 = vmatpush3.msra.mxu1 %v354_v17  ;;  %1283 = vmatprep.mubr.msk.f32.mxu1 %vm1503_vm1, %v1502_v2 }
  0x2a   : > { %1273 = vmatmul.mubr.msk.f32.vlgmr.msra.gmra.mxu0 %vm386_vm0, %v340_v9  ;;  %1284 = vmatmul.mubr.msk.f32.vlgmr.msra.gmra.mxu1 %vm386_vm0, %v340_v9 }
  0x2b   : > { %1286 = vmatprep.subr.mxu0 %v1502_v2  ;;  %1297 = vmatprep.subr.mxu1 %v1502_v2 }
  0x2c   : > { %1287 = vmatpush3.msra.mxu0 %v673_v18  ;;  %1298 = vmatpush3.msra.mxu1 %v677_v19 }
  0x2d   : > { %1288 = vmatprep.subr.mxu0 %v1502_v2  ;;  %1299 = vmatprep.subr.mxu1 %v1502_v2 }
  0x2e   : > { %1289 = vmatpush3.msra.mxu0 %v672_v20  ;;  %1300 = vmatpush3.msra.mxu1 %v676_v21 }
  0x2f   : > { %1290 = vmatprep.subr.mxu0 %v1502_v2  ;;  %1301 = vmatprep.subr.mxu1 %v1502_v2 }
  0x30   : > { %1291 = vmatpush3.msra.mxu0 %v671_v22  ;;  %1302 = vmatpush3.msra.mxu1 %v675_v23 }
  0x31   : > { %1292 = vmatprep.subr.mxu0 %v1502_v2  ;;  %1303 = vmatprep.subr.mxu1 %v1502_v2 }
  0x32   : > { %1293 = vmatpush3.msra.mxu0 %v670_v24  ;;  %1294 = vmatprep.mubr.msk.f32.mxu0 %vm1503_vm1, %v1502_v2 }
  0x33   : > { %1304 = vmatpush3.msra.mxu1 %v674_v25  ;;  %1305 = vmatprep.mubr.msk.f32.mxu1 %vm1503_vm1, %v1502_v2 }
  0x34   : > { %1295 = vmatmul.mubr.msk.f32.vlgmr.msra.gmra.mxu0 %vm386_vm0, %v341_v26  ;;  %1306 = vmatmul.mubr.msk.f32.vlgmr.msra.gmra.mxu1 %vm386_vm0, %v341_v26 }
  0x35   : > { %1308 = vmatprep.subr.mxu0 %v1502_v2  ;;  %1319 = vmatprep.subr.mxu1 %v1502_v2 }
  0x36   : > { %1309 = vmatpush3.msra.mxu0 %v681_v27  ;;  %1320 = vmatpush3.msra.mxu1 %v685_v28 }
  0x37   : > { %1310 = vmatprep.subr.mxu0 %v1502_v2  ;;  %1321 = vmatprep.subr.mxu1 %v1502_v2 }
  0x38   : > { %1311 = vmatpush3.msra.mxu0 %v680_v29  ;;  %1322 = vmatpush3.msra.mxu1 %v684_v30 }
  0x39   : > { %1312 = vmatprep.subr.mxu0 %v1502_v2  ;;  %1323 = vmatprep.subr.mxu1 %v1502_v2 }
  0x3a   : > { %1313 = vmatpush3.msra.mxu0 %v679_v31  ;;  %1324 = vmatpush3.msra.mxu1 %v683_v32 }
  0x3b   : > { %1314 = vmatprep.subr.mxu0 %v1502_v2  ;;  %1325 = vmatprep.subr.mxu1 %v1502_v2 }
  0x3c   : > { %1315 = vmatpush3.msra.mxu0 %v678_v33  ;;  %1316 = vmatprep.mubr.msk.f32.mxu0 %vm1503_vm1, %v1502_v2 }
  0x3d   : > { %1326 = vmatpush3.msra.mxu1 %v682_v34  ;;  %1327 = vmatprep.mubr.msk.f32.mxu1 %vm1503_vm1, %v1502_v2 }
  0x3e   : > { %1317 = vmatmul.mubr.msk.f32.vlgmr.msra.gmra.mxu0 %vm386_vm0, %v341_v26  ;;  %1328 = vmatmul.mubr.msk.f32.vlgmr.msra.gmra.mxu1 %vm386_vm0, %v341_v26 }
  0xe0   : > { %v456_v37 = vpop.f32.mrf.mxu0  ;;  %v526_v38 = vpop.f32.mrf.mxu1 }
  0xe1   : > { %v457_v39 = vadd.f32 %v1176_v35, %v456_v37  ;;  %v527_v40 = vadd.f32 %v1177_v36, %v526_v38 }
  0xe2   : > { %v1252_v41 = vpop.f32.mrf.mxu0  ;;  %v1263_v42 = vpop.f32.mrf.mxu1 }
  0xe3   : > { %998 = vst.msk [vmem:[%s318_s21] sm:$0xff] %vm997_vm2, %v457_v39  ;;  %999 = vst.msk [vmem:[%s318_s21 + $0x8] sm:$0xff] %vm997_vm2, %v527_v40 }
  0xea   : > { %v596_v45 = vpop.f32.mrf.mxu0  ;;  %v666_v46 = vpop.f32.mrf.mxu1 }
  0xeb   : > { %v597_v47 = vadd.f32 %v1178_v43, %v596_v45  ;;  %v667_v48 = vadd.f32 %v1179_v44, %v666_v46 }
  0xec   : > { %v1274_v49 = vpop.f32.mrf.mxu0  ;;  %v1285_v50 = vpop.f32.mrf.mxu1 }
  0xed   : > { %1000 = vst.msk [vmem:[%s318_s21 + $0x10] sm:$0xff] %vm997_vm2, %v597_v47  ;;  %1001 = vst.msk [vmem:[%s318_s21 + $0x18] sm:$0xff] %vm997_vm2, %v667_v48 }
  0xee   : > { %1407 = shalt.err (!%p1404_p5)
}
  0xef   : > { %s1408_s21 = scalar_lea.hbm %s1798_s19, 512  ;;  %s1412_s23 = scalar_lea.hbm %s1907_s6, 1024 }
  0xf0   : > { %p1409_p6 = scmp.ne.s32.totalorder %s1798_s19, %s1408_s21  ;;  %p1413_p10 = scmp.lt.s32.totalorder %s1798_s19, %s1907_s6 }
  0xf1   : > { %p1414_p11 = scmp.lt.s32.totalorder %s1412_s23, %s1408_s21 }
  0xf2   : > { %p1410_p7 = pnand %p1409_p6, %p1588_p4 }
  0xf3   : > { %p1415_p12 = por %p1414_p11, %p1413_p10 }
  0xf4   : > { %p1411_p9 = pneg %p1410_p7 }
  0xf6   : > { %p1416_p13 = pnand %p1415_p12, %p1411_p9 }
  0xf8   : > { %1419 = shalt.err (!%p1416_p13)
}
  0xf9   : > { %s1505_s8 = smov 128   ;;  %s1506_s15 = smov 8   ;;  %v1184_v51 = vld [vmem:[%s1906_s5] ss:$0 sm:$0xff]  ;;  %v1185_v52 = vld [vmem:[%s1906_s5 + $0x1] ss:$0 sm:$0xff]  ;;  %v783_v53 = vpop.f32.mrf.mxu0  ;;  %v853_v54 = vpop.f32.mrf.mxu1 }
  0xfa   : > { %1330 = dma.vmem_to_hbm [thread:$0]  (%p1588_p4), %s1791_s22, 512, %s1798_s19, %s1007_s20, %s1505_s8, %s1505_s8, %s1506_s15   ;;  %v784_v55 = vadd.f32 %v1184_v51, %v783_v53  ;;  %v854_v56 = vadd.f32 %v1185_v52, %v853_v54 }
  0xfb   : > { %v1296_v57 = vpop.f32.mrf.mxu0  ;;  %v1307_v58 = vpop.f32.mrf.mxu1  ;;  %s1913_s17 = sshll.u32 %s1771_s12, 5  ;;  %v1186_v59 = vld [vmem:[%s1906_s5 + $0x2] ss:$0 sm:$0xff]  ;;  %v1187_v60 = vld [vmem:[%s1906_s5 + $0x3] ss:$0 sm:$0xff]  ;;  %s1914_s16 = sshll.u32 %s1492_s27, 9 }
  0xfc   : > { %s325_s18 = scalar_lea.vmem [#allocation4], %s1913_s17  ;;  %s1851_s17 = scalar_lea.hbm %s1908_s7, %s1914_s16 }
  0xfd   : > { %1002 = vst.msk [vmem:[%s325_s18] sm:$0xff] %vm997_vm2, %v784_v55  ;;  %1003 = vst.msk [vmem:[%s325_s18 + $0x8] sm:$0xff] %vm997_vm2, %v854_v56  ;;  %s1043_s22 = sshll.u32 %s325_s18, 4  ;;  %s1012_s19 = scalar_lea.sflag [#allocation5], %s1771_s12  ;;  %s1844_s22 = int_to_ptr.vmem [resolvable:$true] %s1043_s22 }
  0xfe   : > { %v923_v61 = vpop.f32.mrf.mxu0  ;;  %v993_v62 = vpop.f32.mrf.mxu1  ;;  %s1420_s20 = scalar_lea.vmem %s1844_s22, 512  ;;  %s1507_s23 = smov [#allocation4]  }
  0xff   : > { %v924_v63 = vadd.f32 %v1186_v59, %v923_v61  ;;  %v994_v0 = vadd.f32 %v1187_v60, %v993_v62  ;;  %p1421_p0 = scmp.ne.s32.totalorder %s1844_s22, %s1420_s20  ;;  %s1424_s10 = sshll.u32 %s1507_s23, 4  ;;  %s1425_s10 = int_to_ptr.vmem [resolvable:$false] %s1424_s10 }
 0x100   : > { %v1318_v1 = vpop.f32.mrf.mxu0  ;;  %v1329_v2 = vpop.f32.mrf.mxu1  ;;  %s1426_s27 = scalar_lea.vmem %s1425_s10, 1024  ;;  %p1427_p3 = scmp.lt.s32.totalorder %s1844_s22, %s1425_s10 }
 0x101   : > { %1004 = vst.msk [vmem:[%s325_s18 + $0x10] sm:$0xff] %vm997_vm2, %v924_v63  ;;  %1005 = vst.msk [vmem:[%s325_s18 + $0x18] sm:$0xff] %vm997_vm2, %v994_v0  ;;  %p1422_p1 = pnand %p1421_p0, %p1588_p4  ;;  %p1428_p5 = scmp.lt.s32.totalorder %s1426_s27, %s1420_s20 }
 0x103   : > { %p1423_p2 = pneg %p1422_p1  ;;  %p1429_p6 = por %p1428_p5, %p1427_p3 }
 0x105   : > { %p1430_p7 = pnand %p1429_p6, %p1423_p2 }
 0x107   : > { %1433 = shalt.err (!%p1430_p7)
}
 0x108   : > { %s1434_s18 = scalar_lea.hbm %s1851_s17, 512  ;;  %s1438_s30 = scalar_lea.hbm %s1908_s7, 1024 }
 0x109   : > { %p1435_p9 = scmp.ne.s32.totalorder %s1851_s17, %s1434_s18  ;;  %p1439_p12 = scmp.lt.s32.totalorder %s1851_s17, %s1908_s7 }
 0x10a   : > { %p1440_p13 = scmp.lt.s32.totalorder %s1438_s30, %s1434_s18 }
 0x10b   : > { %p1436_p10 = pnand %p1435_p9, %p1588_p4 }
 0x10c   : > { %p1441_p0 = por %p1440_p13, %p1439_p12 }
 0x10d   : > { %p1437_p11 = pneg %p1436_p10 }
 0x10f   : > { %p1442_p1 = pnand %p1441_p0, %p1437_p11 }
 0x111   : > { %1445 = shalt.err (!%p1442_p1)
}
 0x112   : > { %1331 = dma.vmem_to_hbm [thread:$0]  (%p1588_p4), %s1844_s22, 512, %s1851_s17, %s1012_s19, %s1505_s8, %s1505_s8, %s1506_s15  }
 0x113 PF: > { %p1341_p2 = scmp.ge.s32.totalorder %s1500_s29, 2  ;;  %s1058_s20 = sand.u32 1, %s1480_s24  }
 0x114   : > { %s1059_s10 = scalar_lea.sflag [#allocation3], %s1058_s20 }
 0x115   : > { %p1335_p3 = pnand %p1341_p2, %p1595_p8 }
 0x117   : > { %p1336_p5 = pneg %p1335_p3 }
 0x119   : > { %1471 = dma.done.wait (%p1336_p5), %s1059_s10, 512  }
 0x11a   : > { %1473 = vsyncadd (%p1336_p5), %s1059_s10, 4294966784  ;;  %s1068_s27 = scalar_lea.sflag [#allocation5], %s1058_s20 }
 0x11b   : > { %1475 = dma.done.wait (%p1336_p5), %s1068_s27, 512  }
 0x11c   : > { %1477 = vsyncadd (%p1336_p5), %s1068_s27, 4294966784  ;;  %s24_s29 = sadd.s32 1, %s1500_s29   ;;  %s1915_s24 = smov %s1484_s25 }
 0x11d   : > { %p21_p6 = scmp.ge.s32.totalorder %s24_s29, 4   ;;  %s1916_s25 = smov %s1488_s26 }
 0x11e   : > { %s1917_s26 = smov %s1601_s14  ;;  %s1918_s27 = smov %s1496_s28 }
 0x11f   : > { %s1919_s28 = smov %s1921_s9  ;;  %23 = sbr.rel (!%p21_p6) target bundleno = 6 (0x6), region = 99 }
 0x124   :  { %1073 = vsyncpa [#allocation3], 1 }
 0x125   :  { %1075 = vsyncpa [#allocation3 + $0x1], 1 }
 0x126   :  { %1076 = vsyncpa [#allocation5], 1 }
 0x127   :  { %1078 = vsyncpa [#allocation5 + $0x1], 1 }

</bundles_post_ra>
